<compile_context>
chip_gen: v6e
topology: v6e:2x2x1
jax: 0.10.0
libtpu: 0.0.40
codegen_flags: <defaults>
</compile_context>

<pallas_src>
import jax
import jax.numpy as jnp
from jax.experimental import pallas as pl
from jax.experimental.pallas import tpu as pltpu


_TARGET_BLOCK_BYTES = 4 * 1024 * 1024   # ~4 MiB per x block (2-8 MiB sweet spot)
_MAX_COL_TILE = 4096                    # cap on lanes per block (multiple of 128)


def _round_up(n, m):
    return (n + m - 1) // m * m


def _choose_tiles(rows, cols, itemsize):
    # Sublane packing for the dtype: f32 -> 8, bf16/f16 -> 16, int8/fp8 -> 32.
    sub = {4: 8, 2: 16, 1: 32}.get(itemsize, 8)

    # Column tile: keep it lane-dense (multiple of 128) when we can; if cols is
    # small and not a multiple of 128, take the full dim (legal block shape,
    # avoids padding-bandwidth waste at the cost of masked stores).
    if cols % 128 == 0:
        col_tile = min(cols, _MAX_COL_TILE)
    elif cols <= _MAX_COL_TILE:
        col_tile = cols
    else:
        col_tile = _MAX_COL_TILE  # ragged edge handled by the cdiv grid

    # Row tile: fill the per-block byte budget, aligned to sublane packing.
    target_elems = max(1, _TARGET_BLOCK_BYTES // itemsize)
    row_tile = (target_elems // col_tile) // sub * sub
    row_tile = max(sub, min(row_tile, _round_up(rows, sub)))
    return row_tile, col_tile


def _film_kernel(x_ref, g_ref, b_ref, o_ref):
    # Fused FMA on a (row_tile, col_tile) tile; (row_tile, 1) params broadcast
    # across the lane axis.  Compute in f32, cast only on the store.
    x = x_ref[...].astype(jnp.float32)
    g = g_ref[...].astype(jnp.float32)
    b = b_ref[...].astype(jnp.float32)
    o_ref[...] = (g * x + b).astype(o_ref.dtype)
    # TODO(synk): if a downstream elementwise op (activation / residual add)
    # follows FiLM in the model, fuse it here to save a full HBM round trip.


def film(x, gamma, beta):
    """FiLM forward: gamma * x + beta.

    x:      (B, C, H, W)
    gamma:  (B, C, 1, 1) or (B, C)
    beta:   (B, C, 1, 1) or (B, C)
    returns (B, C, H, W)
    """
    B, C, H, W = x.shape
    rows, cols = B * C, H * W
    assert gamma.size == rows and beta.size == rows, "gamma/beta must have B*C elements"

    out_dtype = jnp.result_type(x.dtype, gamma.dtype, beta.dtype)

    x2 = x.reshape(rows, cols)
    g2 = gamma.reshape(rows, 1)
    b2 = beta.reshape(rows, 1)

    row_tile, col_tile = _choose_tiles(rows, cols, jnp.dtype(x.dtype).itemsize)
    grid = (pl.cdiv(rows, row_tile), pl.cdiv(cols, col_tile))

    out2 = pl.pallas_call(
        _film_kernel,
        out_shape=jax.ShapeDtypeStruct((rows, cols), out_dtype),
        grid_spec=pltpu.PrefetchScalarGridSpec(
            num_scalar_prefetch=0,
            grid=grid,
            in_specs=[
                pl.BlockSpec((row_tile, col_tile), lambda i, j: (i, j)),
                # gamma/beta: block only along rows; index is constant across the
                # inner column axis so they are not re-fetched per column step.
                pl.BlockSpec((row_tile, 1), lambda i, j: (i, 0)),
                pl.BlockSpec((row_tile, 1), lambda i, j: (i, 0)),
            ],
            out_specs=pl.BlockSpec((row_tile, col_tile), lambda i, j: (i, j)),
        ),
        compiler_params=pltpu.CompilerParams(
            dimension_semantics=("parallel", "parallel"),
            # ~4 MiB x blocks double-buffered (in + out) stay well under this;
            # 48 MiB is safe on v5e/v6e (128 MiB) and v7x (64 MiB) alike.
            vmem_limit_bytes=48 * 1024 * 1024,
        ),
    )(x2, g2, b2)

    return out2.reshape(B, C, H, W)


if __name__ == "__main__":
    key = jax.random.PRNGKey(0)
    kx, kg, kb = jax.random.split(key, 3)

    B, C, H, W = 2, 4, 16, 16
    x = jax.random.normal(kx, (B, C, H, W), dtype=jnp.float32)
    gamma = jax.random.normal(kg, (B, C, 1, 1), dtype=jnp.float32)
    beta = jax.random.normal(kb, (B, C, 1, 1), dtype=jnp.float32)

    y = film(x, gamma, beta)
    y = jax.block_until_ready(y)

    # Reference check (plain JAX broadcasting, matches PyTorch semantics).
    y_ref = gamma * x + beta
    assert y.shape == (B, C, H, W)
    assert y.dtype == y_ref.dtype
    assert jnp.allclose(y, y_ref, atol=1e-6, rtol=1e-6), "mismatch vs reference"

    print("KERNEL_OK")
</pallas_src>

<mosaic_0001>
module attributes {stable_mosaic.version = 11 : i64} {
  func.func @_film_kernel(%arg0: i32, %arg1: i32, %arg2: memref<8x256xf32, #tpu.memory_space<vmem>>, %arg3: memref<8x1xf32, #tpu.memory_space<vmem>>, %arg4: memref<8x1xf32, #tpu.memory_space<vmem>>, %arg5: memref<8x256xf32, #tpu.memory_space<vmem>>) attributes {dimension_semantics = [#tpu.dimension_semantics<parallel>, #tpu.dimension_semantics<parallel>], iteration_bounds = array<i64: 1, 1>, scalar_prefetch = 0 : i64, scratch_operands = 0 : i64, tpu.core_type = #tpu.core_type<tc>, window_params = [{transform_indices = @transform_0, window_bounds = array<i64: 8, 256>}, {transform_indices = @transform_1, window_bounds = array<i64: 8, 1>}, {transform_indices = @transform_2, window_bounds = array<i64: 8, 1>}, {transform_indices = @transform_3, window_bounds = array<i64: 8, 256>}]} {
    %c0 = arith.constant 0 : index
    %c0_0 = arith.constant 0 : index
    %0 = vector.load %arg2[%c0, %c0_0] : memref<8x256xf32, #tpu.memory_space<vmem>>, vector<8x256xf32>
    %c0_1 = arith.constant 0 : index
    %c0_2 = arith.constant 0 : index
    %1 = vector.load %arg3[%c0_1, %c0_2] : memref<8x1xf32, #tpu.memory_space<vmem>>, vector<8x1xf32>
    %c0_3 = arith.constant 0 : index
    %c0_4 = arith.constant 0 : index
    %2 = vector.load %arg4[%c0_3, %c0_4] : memref<8x1xf32, #tpu.memory_space<vmem>>, vector<8x1xf32>
    %3 = vector.broadcast %1 : vector<8x1xf32> to vector<8x256xf32>
    %4 = arith.mulf %3, %0 : vector<8x256xf32>
    %5 = vector.broadcast %2 : vector<8x1xf32> to vector<8x256xf32>
    %6 = arith.addf %4, %5 : vector<8x256xf32>
    %c0_5 = arith.constant 0 : index
    %c0_6 = arith.constant 0 : index
    %7 = vector.load %arg5[%c0_5, %c0_6] : memref<8x256xf32, #tpu.memory_space<vmem>>, vector<8x256xf32>
    tpu.vector_store %arg5[%c0_5, %c0_6], %6 {strides = array<i32>} : memref<8x256xf32, #tpu.memory_space<vmem>>, vector<8x256xf32>,
    return
  }
  func.func @transform_0(%arg0: i32, %arg1: i32) -> (i32, i32) {
    %c0_i32 = arith.constant 0 : i32
    return %arg0, %arg1 : i32, i32
  }
  func.func @transform_1(%arg0: i32, %arg1: i32) -> (i32, i32) {
    %c0_i32 = arith.constant 0 : i32
    %c0_i32_0 = arith.constant 0 : i32
    return %arg0, %c0_i32 : i32, i32
  }
  func.func @transform_2(%arg0: i32, %arg1: i32) -> (i32, i32) {
    %c0_i32 = arith.constant 0 : i32
    %c0_i32_0 = arith.constant 0 : i32
    return %arg0, %c0_i32 : i32, i32
  }
  func.func @transform_3(%arg0: i32, %arg1: i32) -> (i32, i32) {
    %c0_i32 = arith.constant 0 : i32
    return %arg0, %arg1 : i32, i32
  }
}

</mosaic_0001>

<bundles_post_ra>
// kernel: tpu_custom_call.1
= control target key start
LH: loop header
LB: loop body
LE: loop exit
PB: predicated region body
PF: predicated region fallthrough
CT: control target
= control target key end

     0   :  { %v74_v1 = vmov 0   ;;  %s111_s0 = inlined_call_operand.vmem [shape: f32[8,256], index: 0, kind: input, shape index: {}]   ;;  %s112_s1 = inlined_call_operand.vmem [shape: f32[8,1], index: 1, kind: input, shape index: {}]   ;;  %s113_s2 = inlined_call_operand.vmem [shape: f32[8,1], index: 2, kind: input, shape index: {}]   ;;  %s114_s3 = inlined_call_operand.hbm [shape: f32[8,256], index: 3, kind: output, shape index: {}]  }
   0x1   :  { %v17_v0 = vld [vmem:[%s112_s1] sm:$0xff]  ;;  %51 = vset.pattern.permute.xlu0 %v74_v1 }
   0x2   :  { %8 = vsyncpa [#allocation3], 0  ;;  %21 = vperm.xlu0 %51, %v17_v0   ;;  %v18_v2 = vld [vmem:[%s113_s2] sm:$0xff]  ;;  %v16_v5 = vld [vmem:[%s111_s0 + $0x8] sm:$0xff]  ;;  %s75_s20 = smov [#allocation2]  }
   0x3   :  { %v15_v4 = vld [vmem:[%s111_s0] sm:$0xff]  ;;  %s41_s1 = sshll.u32 %s75_s20, 4  ;;  %s42_s1 = int_to_ptr.vmem [resolvable:$true] %s41_s1 }
   0x4   :  { %s52_s2 = scalar_lea.vmem %s42_s1, 256  ;;  %p57_p1 = scmp.lt.s32.totalorder %s42_s1, %s42_s1 }
   0x5   :  { %p53_p0 = scmp.ne.s32.totalorder %s42_s1, %s52_s2  ;;  %p58_p2 = scmp.lt.s32.totalorder %s52_s2, %s52_s2 }
   0x6   :  { %28 = vperm.xlu0 %51, %v18_v2  }
   0x7   :  { %p59_p3 = por %p58_p2, %p57_p1 }
   0x9   :  { %p60_p4 = pnand %p59_p3, %p53_p0 }
  0x7d   :  { %v22_v3 = vpop.permute.xlu0 %21 }
  0x7e   :  { %v24_v6 = vmul.f32 %v22_v3, %v15_v4  ;;  %v25_v7 = vmul.f32 %v22_v3, %v16_v5 }
  0x81   :  { %v29_v8 = vpop.permute.xlu0 %28 }
  0x82   :  { %v31_v9 = vadd.f32 %v29_v8, %v24_v6  ;;  %v32_v10 = vadd.f32 %v29_v8, %v25_v7 }
  0x84   :  { %33 = vst [vmem:[#allocation2] sm:$0xff] %v31_v9  ;;  %34 = vst [vmem:[#allocation2 + $0x8] sm:$0xff] %v32_v10 }
  0x85   :  { %63 = shalt.err (!%p60_p4)
}
  0x86   :  { %44 = dma.vmem_to_hbm [thread:$0]  %s42_s1, 256, %s114_s3, [#allocation3]  }
  0x87   :  { %72 = dma.done.wait [#allocation3], 256  }
  0x88   :  { %73 = vsyncadd [#allocation3], 4294967040 }
  0x89   :  { %48 = vsyncpa [#allocation3], 1 }

</bundles_post_ra>
